<compile_context>
chip_gen: v7x
topology: tpu7x:2x2x1
jax: 0.10.0
libtpu: 0.0.40
codegen_flags: <defaults>
</compile_context>

<pallas_src>
import functools

import jax
import jax.numpy as jnp
from jax.experimental import pallas as pl
from jax.experimental.pallas import tpu as pltpu


def _cdiv(a, b):
    return -(-a // b)


def _round_up(a, b):
    return _cdiv(a, b) * b


def _fold8(v):
    # (TM, 128) -> (8, 128) partial sums; pure vreg adds (VPU), no cross-lane XLU.
    return jnp.sum(v.reshape(-1, 8, v.shape[-1]), axis=0)


def _cfd_kernel(x_ref, t_ref, pt_ref, den_ref, foc_ref, *, alpha, gamma, smooth):
    j = pl.program_id(1)

    @pl.when(j == 0)
    def _():
        pt_ref[...] = jnp.zeros_like(pt_ref)
        den_ref[...] = jnp.zeros_like(den_ref)
        foc_ref[...] = jnp.zeros_like(foc_ref)

    x = x_ref[...].astype(jnp.float32)   # (TM, 128)
    t = t_ref[...].astype(jnp.float32)   # (TM, 128)

    p = jax.nn.sigmoid(x)
    one_m_p = 1.0 - p
    pt = p * t

    # (1-p)^gamma and p^gamma: integer gamma via repeated multiply (VPU);
    # only non-integer gamma falls back to jnp.power (exp+log on the EUP).
    if isinstance(gamma, (int, float)) and float(gamma).is_integer() and gamma >= 1:
        w_pos = one_m_p
        w_neg = p
        for _ in range(int(gamma) - 1):
            w_pos = w_pos * one_m_p
            w_neg = w_neg * p
    else:
        w_pos = jnp.power(one_m_p, gamma)
        w_neg = jnp.power(p, gamma)

    focal = (-alpha) * (w_pos * t * jnp.log(p + smooth)
                        + w_neg * (1.0 - t) * jnp.log(one_m_p + smooth))

    # Accumulate into the resident (8, 128) per-core output blocks.
    pt_ref[...] += _fold8(pt)
    den_ref[...] += _fold8(p + t)
    foc_ref[...] += _fold8(focal)


def combined_focal_dice_loss(logits, targets, alpha=1.0, gamma=2,
                             smooth=1e-6, lambda_coeff=0.5):
    assert logits.shape == targets.shape
    n = int(logits.size)

    # NOTE: targets could be passed as bf16/int8 upstream to halve their HBM
    # traffic; the kernel casts to f32 either way.
    x = logits.reshape(-1).astype(jnp.float32)
    t = targets.reshape(-1).astype(jnp.float32)

    LANES, SUB, NC, TM_MAX = 128, 8, 2, 2048

    m_raw = _cdiv(n, LANES)                              # rows of 128 lanes
    tm = min(TM_MAX, _round_up(_cdiv(m_raw, NC), SUB))   # rows per block
    steps = _cdiv(m_raw, NC * tm)                        # reduction steps/core
    m = NC * tm * steps
    n_pad = m * LANES

    if n_pad != n:
        # logits -> -1e30 so sigmoid == 0 exactly; targets -> 0.  Padded
        # elements then contribute exactly zero to all accumulated sums.
        x = jnp.pad(x, (0, n_pad - n), constant_values=-1e30)
        t = jnp.pad(t, (0, n_pad - n), constant_values=0.0)

    x2 = x.reshape(m, LANES)
    t2 = t.reshape(m, LANES)

    kernel = functools.partial(
        _cfd_kernel, alpha=float(alpha), gamma=gamma, smooth=float(smooth))

    in_spec = pl.BlockSpec((tm, LANES), lambda p, j, s=steps: (p * s + j, 0))
    acc_shape = jax.ShapeDtypeStruct((NC * SUB, LANES), jnp.float32)
    acc_spec = pl.BlockSpec((SUB, LANES), lambda p, j: (p, 0))

    pt_sums, den_sums, foc_sums = pl.pallas_call(
        kernel,
        out_shape=(acc_shape, acc_shape, acc_shape),
        grid_spec=pltpu.PrefetchScalarGridSpec(
            num_scalar_prefetch=0,
            grid=(NC, steps),
            in_specs=[in_spec, in_spec],
            out_specs=(acc_spec, acc_spec, acc_spec),
        ),
        compiler_params=pltpu.CompilerParams(
            dimension_semantics=("parallel", "arbitrary"),
            vmem_limit_bytes=32 * 1024 * 1024,
        ),
    )(x2, t2)

    # Tiny scalar epilogue (combining per-core partial sums) in plain JAX.
    s_pt = jnp.sum(pt_sums)
    s_den = jnp.sum(den_sums)
    s_foc = jnp.sum(foc_sums)

    dice_loss = 1.0 - (2.0 * s_pt + smooth) / (s_den + smooth)
    focal_loss = s_foc / n
    return lambda_coeff * focal_loss + (1.0 - lambda_coeff) * dice_loss


def _reference(logits, targets, alpha=1.0, gamma=2, smooth=1e-6, lambda_coeff=0.5):
    probs = jax.nn.sigmoid(logits.astype(jnp.float32))
    t = targets.astype(jnp.float32)
    intersection = jnp.sum(probs * t)
    dice_loss = 1.0 - (2.0 * intersection + smooth) / (jnp.sum(probs) + jnp.sum(t) + smooth)
    focal_pos = -alpha * (1.0 - probs) ** gamma * t * jnp.log(probs + smooth)
    focal_neg = -alpha * probs ** gamma * (1.0 - t) * jnp.log(1.0 - probs + smooth)
    focal_loss = jnp.mean(focal_pos + focal_neg)
    return lambda_coeff * focal_loss + (1.0 - lambda_coeff) * dice_loss


if __name__ == "__main__":
    key = jax.random.PRNGKey(0)
    k1, k2 = jax.random.split(key)

    B, C, H, W = 2, 4, 16, 16
    logits = jax.random.normal(k1, (B, C, H, W), dtype=jnp.float32)
    targets = jax.random.bernoulli(k2, p=0.5, shape=(B, C, H, W)).astype(jnp.float32)

    loss = combined_focal_dice_loss(logits, targets, alpha=1.0, gamma=2,
                                    smooth=1e-6, lambda_coeff=0.5)
    loss = jax.block_until_ready(loss)

    ref = _reference(logits, targets, alpha=1.0, gamma=2, smooth=1e-6, lambda_coeff=0.5)
    assert jnp.allclose(loss, ref, rtol=1e-5, atol=1e-6), (loss, ref)

    print("KERNEL_OK")
</pallas_src>

<mosaic_0001>
module attributes {stable_mosaic.version = 11 : i64} {
  func.func @_cfd_kernel(%arg0: i32, %arg1: i32, %arg2: memref<8x128xf32, #tpu.memory_space<vmem>>, %arg3: memref<8x128xf32, #tpu.memory_space<vmem>>, %arg4: memref<8x128xf32, #tpu.memory_space<vmem>>, %arg5: memref<8x128xf32, #tpu.memory_space<vmem>>, %arg6: memref<8x128xf32, #tpu.memory_space<vmem>>) attributes {dimension_semantics = [#tpu.dimension_semantics<parallel>, #tpu.dimension_semantics<arbitrary>], iteration_bounds = array<i64: 2, 1>, scalar_prefetch = 0 : i64, scratch_operands = 0 : i64, tpu.core_type = #tpu.core_type<tc>, window_params = [{transform_indices = @transform_0, window_bounds = array<i64: 8, 128>}, {transform_indices = @transform_1, window_bounds = array<i64: 8, 128>}, {transform_indices = @transform_2, window_bounds = array<i64: 8, 128>}, {transform_indices = @transform_3, window_bounds = array<i64: 8, 128>}, {transform_indices = @transform_4, window_bounds = array<i64: 8, 128>}]} {
    %c0_i32 = arith.constant 0 : i32
    %0 = arith.cmpi eq, %arg1, %c0_i32 : i32
    %1 = arith.extui %0 : i1 to i32
    %c0_i32_0 = arith.constant 0 : i32
    %2 = arith.cmpi ne, %1, %c0_i32_0 : i32
    scf.if %2 {
      %cst_24 = arith.constant 0.000000e+00 : f32
      %46 = vector.broadcast %cst_24 : f32 to vector<8x128xf32>
      %c0_25 = arith.constant 0 : index
      %c0_26 = arith.constant 0 : index
      %47 = vector.load %arg4[%c0_25, %c0_26] : memref<8x128xf32, #tpu.memory_space<vmem>>, vector<8x128xf32>
      tpu.vector_store %arg4[%c0_25, %c0_26], %46 {strides = array<i32>} : memref<8x128xf32, #tpu.memory_space<vmem>>, vector<8x128xf32>,
      %cst_27 = arith.constant 0.000000e+00 : f32
      %48 = vector.broadcast %cst_27 : f32 to vector<8x128xf32>
      %c0_28 = arith.constant 0 : index
      %c0_29 = arith.constant 0 : index
      %49 = vector.load %arg5[%c0_28, %c0_29] : memref<8x128xf32, #tpu.memory_space<vmem>>, vector<8x128xf32>
      tpu.vector_store %arg5[%c0_28, %c0_29], %48 {strides = array<i32>} : memref<8x128xf32, #tpu.memory_space<vmem>>, vector<8x128xf32>,
      %cst_30 = arith.constant 0.000000e+00 : f32
      %50 = vector.broadcast %cst_30 : f32 to vector<8x128xf32>
      %c0_31 = arith.constant 0 : index
      %c0_32 = arith.constant 0 : index
      %51 = vector.load %arg6[%c0_31, %c0_32] : memref<8x128xf32, #tpu.memory_space<vmem>>, vector<8x128xf32>
      tpu.vector_store %arg6[%c0_31, %c0_32], %50 {strides = array<i32>} : memref<8x128xf32, #tpu.memory_space<vmem>>, vector<8x128xf32>,
    } else {
    }
    %c0 = arith.constant 0 : index
    %c0_1 = arith.constant 0 : index
    %3 = vector.load %arg2[%c0, %c0_1] : memref<8x128xf32, #tpu.memory_space<vmem>>, vector<8x128xf32>
    %c0_2 = arith.constant 0 : index
    %c0_3 = arith.constant 0 : index
    %4 = vector.load %arg3[%c0_2, %c0_3] : memref<8x128xf32, #tpu.memory_space<vmem>>, vector<8x128xf32>
    %5 = arith.negf %3 : vector<8x128xf32>
    %6 = math.exp %5 : vector<8x128xf32>
    %cst = arith.constant 1.000000e+00 : f32
    %7 = vector.broadcast %cst : f32 to vector<8x128xf32>
    %8 = arith.addf %7, %6 : vector<8x128xf32>
    %9 = arith.divf %7, %8 : vector<8x128xf32>
    %cst_4 = arith.constant 1.000000e+00 : f32
    %10 = vector.broadcast %cst_4 : f32 to vector<8x128xf32>
    %11 = arith.subf %10, %9 : vector<8x128xf32>
    %12 = arith.mulf %9, %4 : vector<8x128xf32>
    %13 = arith.mulf %11, %11 : vector<8x128xf32>
    %14 = arith.mulf %9, %9 : vector<8x128xf32>
    %15 = arith.mulf %13, %4 : vector<8x128xf32>
    %cst_5 = arith.constant 9.99999997E-7 : f32
    %16 = vector.broadcast %cst_5 : f32 to vector<8x128xf32>
    %17 = arith.addf %9, %16 : vector<8x128xf32>
    %18 = math.log %17 : vector<8x128xf32>
    %19 = arith.mulf %15, %18 : vector<8x128xf32>
    %cst_6 = arith.constant 1.000000e+00 : f32
    %20 = vector.broadcast %cst_6 : f32 to vector<8x128xf32>
    %21 = arith.subf %20, %4 : vector<8x128xf32>
    %22 = arith.mulf %14, %21 : vector<8x128xf32>
    %cst_7 = arith.constant 9.99999997E-7 : f32
    %23 = vector.broadcast %cst_7 : f32 to vector<8x128xf32>
    %24 = arith.addf %11, %23 : vector<8x128xf32>
    %25 = math.log %24 : vector<8x128xf32>
    %26 = arith.mulf %22, %25 : vector<8x128xf32>
    %27 = arith.addf %19, %26 : vector<8x128xf32>
    %cst_8 = arith.constant -1.000000e+00 : f32
    %28 = vector.broadcast %cst_8 : f32 to vector<8x128xf32>
    %29 = arith.mulf %28, %27 : vector<8x128xf32>
    %c0_9 = arith.constant 0 : index
    %c0_10 = arith.constant 0 : index
    %30 = vector.load %arg4[%c0_9, %c0_10] : memref<8x128xf32, #tpu.memory_space<vmem>>, vector<8x128xf32>
    %31 = vector.shape_cast %12 : vector<8x128xf32> to vector<1x8x128xf32>
    %cst_11 = arith.constant dense<0.000000e+00> : vector<8x128xf32>
    %32 = vector.multi_reduction <add>, %31, %cst_11 [0] : vector<1x8x128xf32> to vector<8x128xf32>
    %33 = arith.addf %30, %32 : vector<8x128xf32>
    %c0_12 = arith.constant 0 : index
    %c0_13 = arith.constant 0 : index
    %34 = vector.load %arg4[%c0_12, %c0_13] : memref<8x128xf32, #tpu.memory_space<vmem>>, vector<8x128xf32>
    tpu.vector_store %arg4[%c0_12, %c0_13], %33 {strides = array<i32>} : memref<8x128xf32, #tpu.memory_space<vmem>>, vector<8x128xf32>,
    %c0_14 = arith.constant 0 : index
    %c0_15 = arith.constant 0 : index
    %35 = vector.load %arg5[%c0_14, %c0_15] : memref<8x128xf32, #tpu.memory_space<vmem>>, vector<8x128xf32>
    %36 = arith.addf %9, %4 : vector<8x128xf32>
    %37 = vector.shape_cast %36 : vector<8x128xf32> to vector<1x8x128xf32>
    %cst_16 = arith.constant dense<0.000000e+00> : vector<8x128xf32>
    %38 = vector.multi_reduction <add>, %37, %cst_16 [0] : vector<1x8x128xf32> to vector<8x128xf32>
    %39 = arith.addf %35, %38 : vector<8x128xf32>
    %c0_17 = arith.constant 0 : index
    %c0_18 = arith.constant 0 : index
    %40 = vector.load %arg5[%c0_17, %c0_18] : memref<8x128xf32, #tpu.memory_space<vmem>>, vector<8x128xf32>
    tpu.vector_store %arg5[%c0_17, %c0_18], %39 {strides = array<i32>} : memref<8x128xf32, #tpu.memory_space<vmem>>, vector<8x128xf32>,
    %c0_19 = arith.constant 0 : index
    %c0_20 = arith.constant 0 : index
    %41 = vector.load %arg6[%c0_19, %c0_20] : memref<8x128xf32, #tpu.memory_space<vmem>>, vector<8x128xf32>
    %42 = vector.shape_cast %29 : vector<8x128xf32> to vector<1x8x128xf32>
    %cst_21 = arith.constant dense<0.000000e+00> : vector<8x128xf32>
    %43 = vector.multi_reduction <add>, %42, %cst_21 [0] : vector<1x8x128xf32> to vector<8x128xf32>
    %44 = arith.addf %41, %43 : vector<8x128xf32>
    %c0_22 = arith.constant 0 : index
    %c0_23 = arith.constant 0 : index
    %45 = vector.load %arg6[%c0_22, %c0_23] : memref<8x128xf32, #tpu.memory_space<vmem>>, vector<8x128xf32>
    tpu.vector_store %arg6[%c0_22, %c0_23], %44 {strides = array<i32>} : memref<8x128xf32, #tpu.memory_space<vmem>>, vector<8x128xf32>,
    return
  }
  func.func @transform_0(%arg0: i32, %arg1: i32) -> (i32, i32) {
    %c1_i32 = arith.constant 1 : i32
    %0 = arith.muli %arg0, %c1_i32 : i32
    %1 = arith.addi %0, %arg1 : i32
    %c0_i32 = arith.constant 0 : i32
    %c0_i32_0 = arith.constant 0 : i32
    return %1, %c0_i32 : i32, i32
  }
  func.func @transform_1(%arg0: i32, %arg1: i32) -> (i32, i32) {
    %c1_i32 = arith.constant 1 : i32
    %0 = arith.muli %arg0, %c1_i32 : i32
    %1 = arith.addi %0, %arg1 : i32
    %c0_i32 = arith.constant 0 : i32
    %c0_i32_0 = arith.constant 0 : i32
    return %1, %c0_i32 : i32, i32
  }
  func.func @transform_2(%arg0: i32, %arg1: i32) -> (i32, i32) {
    %c0_i32 = arith.constant 0 : i32
    %c0_i32_0 = arith.constant 0 : i32
    return %arg0, %c0_i32 : i32, i32
  }
  func.func @transform_3(%arg0: i32, %arg1: i32) -> (i32, i32) {
    %c0_i32 = arith.constant 0 : i32
    %c0_i32_0 = arith.constant 0 : i32
    return %arg0, %c0_i32 : i32, i32
  }
  func.func @transform_4(%arg0: i32, %arg1: i32) -> (i32, i32) {
    %c0_i32 = arith.constant 0 : i32
    %c0_i32_0 = arith.constant 0 : i32
    return %arg0, %c0_i32 : i32, i32
  }
}

</mosaic_0001>

<bundles_post_ra>
// kernel: tpu_custom_call.1
= control target key start
LH: loop header
LB: loop body
LE: loop exit
PB: predicated region body
PF: predicated region fallthrough
CT: control target
= control target key end

     0   :  { %10 = vsyncpa [#allocation3], 0  ;;  %s1207_s0 = inlined_call_operand.hbm [shape: f32[16,128], index: 0, kind: input, shape index: {}]   ;;  %s1208_s1 = inlined_call_operand.hbm [shape: f32[16,128], index: 1, kind: input, shape index: {}]   ;;  %s1209_s2 = inlined_call_operand.hbm [shape: f32[16,128], index: 2, kind: output, shape index: {0}]   ;;  %s1210_s3 = inlined_call_operand.hbm [shape: f32[16,128], index: 3, kind: output, shape index: {1}]   ;;  %s1211_s4 = inlined_call_operand.hbm [shape: f32[16,128], index: 4, kind: output, shape index: {2}]  }
   0x1   :  { %12 = vsyncpa [#allocation3 + $0x1], 0 }
   0x2   :  { %13 = vsyncpa [#allocation6], 0 }
   0x3   :  { %15 = vsyncpa [#allocation6 + $0x1], 0 }
   0x4   :  { %16 = vsyncpa [#allocation4], 0 }
   0x5   :  { %18 = vsyncpa [#allocation4 + $0x1], 0 }
   0x6   :  { %19 = vsyncpa [#allocation9], 0 }
   0x7   :  { %21 = vsyncpa [#allocation9 + $0x1], 0  ;;  %s894_s15 = smov 0   ;;  %s896_s16 = smov 0  }
   0x8   :  { %s898_s17 = smov 0   ;;  %s900_s18 = smov 0  }
   0x9   :  { %s902_s19 = smov 0   ;;  %s904_s20 = smov 0  }
   0xa LB: > { %s925_s21 = sadd.s32 4294967295, %s862_s20   ;;  %s1212_s22 = sadd.s32 4294967294, %s862_s20   ;;  %s862_s20 = sphi %s904_s20, %s27_s20   ;;  %s858_s19 = sphi %s902_s19, %s1233_s19   ;;  %s854_s18 = sphi %s900_s18, %s1232_s18   ;;  %s850_s17 = sphi %s898_s17, %s1231_s17   ;;  %s846_s16 = sphi %s896_s16, %s1230_s16   ;;  %s842_s15 = sphi %s894_s15, %s1229_s15  }
   0xb   : > { %s39_s23 = sadd.s32 1, %s858_s19  ;;  %s48_s24 = sadd.s32 1, %s850_s17 }
   0xc   : > { %p41_p0 = scmp.ge.s32.totalorder %s39_s23, 2  ;;  %p55_p1 = scmp.ne.s32.totalorder %s850_s17, %s846_s16 }
   0xd   : > { %p56_p2 = scmp.eq.s32.totalorder %s862_s20, 0  ;;  %p61_p3 = scmp.ne.s32.totalorder %s846_s16, %s842_s15 }
   0xe   : > { %s1235_s23 = smov (%p41_p0, %s39_s23), 0  ;;  %p62_p5 = scmp.eq.s32.totalorder %s925_s21, 0 }
   0xf   : > { %p937_p4 = por %p56_p2, %p55_p1  ;;  %s45_s26 = ssub.s32 %s858_s19, %s1235_s23 }
  0x10   : > { %p113_p6 = scmp.eq.s32.totalorder %s925_s21, 1  ;;  %p46_p7 = scmp.eq.s32.totalorder %s45_s26, 0 }
  0x11   : > { %p945_p8 = por %p62_p5, %p61_p3  ;;  %p119_p10 = scmp.eq.s32.totalorder %s1212_s22, 1 }
  0x12   : > { %p949_p9 = por %p113_p6, %p55_p1  ;;  %p597_p13 = scmp.lt.s32.totalorder %s862_s20, 2 }
  0x13   : > { %s1216_s27 = scalar_select %p945_p8, 1, 0 }
  0x14   : > { %s1217_s28 = scalar_select %p949_p9, 1, 0 }
  0x15   : > { %s956_s29 = scalar_select %p46_p7, %s850_s17, %s48_s24  }
  0x16   : > { %p958_p11 = por %p119_p10, %p61_p3  ;;  %s965_s5 = sand.u32 1, %s850_s17  }
  0x17   : > { %s551_s6 = sshll.u32 %s965_s5, 3  ;;  %s552_s7 = sshll.u32 %s858_s19, 7 }
  0x18   : > { %s1218_s30 = scalar_select %p958_p11, 1, 0 }
  0x19   : > { %s974_s10 = scalar_lea.hbm %s1207_s0, %s552_s7  ;;  %s195_s11 = scalar_lea.vmem [#allocation2], %s551_s6 }
  0x1a   : > { %s203_s12 = sshll.u32 %s195_s11, 4  ;;  %p982_p0 = pnand %p597_p13, %p937_p4  ;;  %s978_s12 = int_to_ptr.vmem [resolvable:$true] %s203_s12 }
  0x1b   : > { %s192_s14 = scalar_lea.sflag [#allocation3], %s965_s5  ;;  %s656_s24 = scalar_lea.hbm %s974_s10, 128 }
  0x1c   : > { %p657_p3 = scmp.ne.s32.totalorder %s974_s10, %s656_s24  ;;  %p658_p5 = pneg %p982_p0 }
  0x1d   : > { %s661_s25 = scalar_lea.hbm %s1207_s0, 256  ;;  %p662_p4 = scmp.lt.u32.totalorder %s974_s10, %s1207_s0 }
  0x1e   : > { %p659_p6 = pnand %p658_p5, %p657_p3  ;;  %p663_p10 = scmp.lt.u32.totalorder %s661_s25, %s656_s24 }
  0x1f   : > { %p665_p12 = scmp.lt.u32.totalorder %s656_s24, %s974_s10 }
  0x20   : > { %p660_p7 = pneg %p659_p6  ;;  %p664_p13 = por %p663_p10, %p662_p4 }
  0x22   : > { %p666_p1 = por %p665_p12, %p664_p13 }
  0x24   : > { %p667_p2 = pnand %p666_p1, %p660_p7 }
  0x26   : > { %670 = shalt.err (!%p667_p2)
}
  0x27   : > { %s671_s22 = scalar_lea.vmem %s978_s12, 128  ;;  %s864_s26 = smov [#allocation2]  }
  0x28   : > { %p672_p3 = scmp.ne.s32.totalorder %s978_s12, %s671_s22  ;;  %s676_s8 = sshll.u32 %s864_s26, 4  ;;  %s677_s8 = int_to_ptr.vmem [resolvable:$false] %s676_s8 }
  0x29   : > { %s678_s9 = scalar_lea.vmem %s677_s8, 256  ;;  %p679_p9 = scmp.lt.s32.totalorder %s978_s12, %s677_s8 }
  0x2a   : > { %p674_p6 = pnand %p672_p3, %p658_p5  ;;  %p680_p4 = scmp.lt.s32.totalorder %s678_s9, %s671_s22 }
  0x2c   : > { %p675_p11 = pneg %p674_p6  ;;  %p681_p10 = por %p680_p4, %p679_p9 }
  0x2e   : > { %p682_p12 = pnand %p681_p10, %p675_p11 }
  0x30   : > { %685 = shalt.err (!%p682_p12)
}
  0x31   : > { %583 = dma.hbm_to_vmem [thread:$0]  (!%p982_p0), %s974_s10, 128, %s978_s12, %s192_s14  }
  0x32   : > { %p1220_p1 = scmp.lt.s32.totalorder %s862_s20, 3  ;;  %p1221_p2 = scmp.ge.s32.totalorder %s862_s20, 1 }
  0x33   : > { %s1027_s11 = scalar_lea.hbm %s1208_s1, %s552_s7  ;;  %s214_s26 = scalar_lea.vmem [#allocation5], %s551_s6 }
  0x34   : > { %p1018_p7 = pnand %p1221_p2, %p1220_p1  ;;  %s222_s8 = sshll.u32 %s214_s26, 4  ;;  %s223_s8 = int_to_ptr.vmem [resolvable:$true] %s222_s8 }
  0x35   : > { %s211_s10 = scalar_lea.sflag [#allocation6], %s965_s5  ;;  %s686_s12 = scalar_lea.hbm %s1027_s11, 128 }
  0x36   : > { %s1222_s24 = scalar_select %p1018_p7, 1, 0 }
  0x37   : > { %p687_p9 = scmp.ne.s32.totalorder %s1027_s11, %s686_s12  ;;  %s691_s7 = scalar_lea.hbm %s1208_s1, 256 }
  0x38   : > { %p692_p3 = scmp.lt.u32.totalorder %s1027_s11, %s1208_s1  ;;  %p693_p6 = scmp.lt.u32.totalorder %s691_s7, %s686_s12 }
  0x39   : > { %p689_p11 = pnand %p687_p9, %p658_p5  ;;  %p695_p10 = scmp.lt.u32.totalorder %s686_s12, %s1027_s11 }
  0x3a   : > { %p694_p4 = por %p693_p6, %p692_p3 }
  0x3b   : > { %p690_p13 = pneg %p689_p11 }
  0x3c   : > { %p696_p12 = por %p695_p10, %p694_p4 }
  0x3e   : > { %p697_p1 = pnand %p696_p12, %p690_p13 }
  0x40   : > { %700 = shalt.err (!%p697_p1)
}
  0x41   : > { %s701_s5 = scalar_lea.vmem %s223_s8, 128  ;;  %s865_s6 = smov [#allocation5]  }
  0x42   : > { %p702_p2 = scmp.ne.s32.totalorder %s223_s8, %s701_s5  ;;  %s706_s26 = sshll.u32 %s865_s6, 4  ;;  %s707_s26 = int_to_ptr.vmem [resolvable:$false] %s706_s26 }
  0x43   : > { %s708_s14 = scalar_lea.vmem %s707_s26, 256  ;;  %p709_p8 = scmp.lt.s32.totalorder %s223_s8, %s707_s26 }
  0x44   : > { %p704_p9 = pnand %p702_p2, %p658_p5  ;;  %p710_p7 = scmp.lt.s32.totalorder %s708_s14, %s701_s5 }
  0x46   : > { %p705_p11 = pneg %p704_p9  ;;  %p711_p3 = por %p710_p7, %p709_p8 }
  0x48   : > { %p712_p6 = pnand %p711_p3, %p705_p11 }
  0x4a   : > { %715 = shalt.err (!%p712_p6)
}
  0x4b   : > { %586 = dma.hbm_to_vmem [thread:$0]  (!%p982_p0), %s1027_s11, 128, %s223_s8, %s211_s10  }
  0x4c   : > { %p1223_p13 = scmp.ne.s32.totalorder %s1222_s24, 0 }
  0x4d   : > { %s1054_s12 = sand.u32 (!%p1223_p13), 1, %s846_s16   ;;  %p1224_p8 = scmp.ne.s32.totalorder (!%p1223_p13), %s1216_s27, 0 }
  0x4e   : > { %231 = sbr.rel (%p1223_p13) target bundleno = 180 (0xb4), region = 28  ;;  %s1057_s9 = sshll.u32 (!%p1223_p13), %s1054_s12, 3 }
  0x4f   : > { %s234_s7 = scalar_lea.sflag (!%p1223_p13), [#allocation3], %s1054_s12  ;;  %s237_s22 = scalar_lea.vmem (!%p1223_p13), [#allocation2], %s1057_s9 }
  0x55   : > { %825 = dma.done.wait (%p1224_p8), %s234_s7, 128  }
  0x56   : > { %827 = vsyncadd (%p1224_p8), %s234_s7, 4294967168  ;;  %s243_s13 = scalar_lea.sflag [#allocation6], %s1054_s12  ;;  %s246_s24 = scalar_lea.vmem [#allocation5], %s1057_s9 }
  0x57   : > { %829 = dma.done.wait (%p1224_p8), %s243_s13, 128  }
  0x58   : > { %831 = vsyncadd (%p1224_p8), %s243_s13, 4294967168  ;;  %v295_v0 = vld [vmem:[%s237_s22] sm:$0xff]  ;;  %s338_s11 = sand.u32 1, %s925_s21   ;;  %s1073_s8 = sshll.u32 %s854_s18, 7  ;;  %v1077_v5 = vld [vmem:[%s246_s24] sm:$0xff] }
  0x59   : > { %v561_v1 = vmul.f32 -1.442695, %v295_v0  ;;  %s278_s27 = scalar_lea.vmem [#allocation8], %s1057_s9  ;;  %s271_s18 = scalar_lea.vmem [#allocation7], %s1057_s9 }
  0x5a   : > { %s370_s10 = sshll.u32 %s278_s27, 4  ;;  %s357_s21 = sshll.u32 %s271_s18, 4  ;;  %s1095_s10 = int_to_ptr.vmem [resolvable:$true] %s370_s10  ;;  %s1104_s21 = int_to_ptr.vmem [resolvable:$true] %s357_s21 }
  0x5b   : > { %648 = vpow2.f32 %v561_v1  ;;  %s1093_s6 = scalar_lea.hbm %s1210_s3, %s1073_s8  ;;  %s1102_s7 = scalar_lea.hbm %s1209_s2, %s1073_s8 }
  0x5c   : > { %s1106_s22 = scalar_lea.sflag [#allocation9], %s338_s11  ;;  %s716_s13 = scalar_lea.vmem %s1095_s10, 128 }
  0x5d   : > { %p717_p0 = scmp.ne.s32.totalorder %s1095_s10, %s716_s13  ;;  %p1225_p5 = scmp.ne.s32.totalorder %s1217_s28, 0 }
  0x5e   : > { %s866_s24 = smov [#allocation8]  }
  0x5f   : > { %p718_p7 = pnand %p717_p0, %p1225_p5  ;;  %s720_s25 = sshll.u32 %s866_s24, 4  ;;  %s721_s25 = int_to_ptr.vmem [resolvable:$false] %s720_s25 }
  0x60   : > { %s722_s5 = scalar_lea.vmem %s721_s25, 256  ;;  %p723_p10 = scmp.lt.s32.totalorder %s1095_s10, %s721_s25 }
  0x61   : > { %p719_p4 = pneg %p718_p7  ;;  %p724_p12 = scmp.lt.s32.totalorder %s722_s5, %s716_s13 }
  0x63   : > { %p725_p1 = por %p724_p12, %p723_p10 }
  0x65   : > { %v649_v2 = vpop.eup %648  ;;  %p726_p2 = pnand %p725_p1, %p719_p4 }
  0x66   : > { %v300_v3 = vadd.f32 1.0, %v649_v2 }
  0x68   : > { %650 = vrcp.f32 %v300_v3 }
  0x72   : > { %v1075_v4 = vpop.eup %650 }
  0x73   : > { %v325_v6 = vadd.f32 %v1075_v4, %v1077_v5  ;;  %v304_v7 = vmul.f32 %v1075_v4, %v1077_v5  ;;  %v1085_v8 = vsub.f32 1.0, %v1075_v4  ;;  %v308_v9 = vadd.f32 1e-06, %v1075_v4 }
  0x75   : > { %652 = vlog2.f32 %v308_v9  ;;  %v314_v10 = vadd.f32 1e-06, %v1085_v8  ;;  %328 = vst [vmem:[%s278_s27] sm:$0xff] %v325_v6  ;;  %323 = vst [vmem:[%s271_s18] sm:$0xff] %v304_v7 }
  0x77   : > { %654 = vlog2.f32 %v314_v10 }
  0x78   : > { %729 = shalt.err (!%p726_p2)
}
  0x79   : > { %s730_s11 = scalar_lea.hbm %s1093_s6, 128  ;;  %s734_s26 = scalar_lea.hbm %s1210_s3, 256 }
  0x7a   : > { %p731_p9 = scmp.ne.s32.totalorder %s1093_s6, %s730_s11  ;;  %p735_p6 = scmp.lt.u32.totalorder %s1093_s6, %s1210_s3 }
  0x7b   : > { %p736_p13 = scmp.lt.u32.totalorder %s734_s26, %s730_s11  ;;  %p738_p0 = scmp.lt.u32.totalorder %s730_s11, %s1093_s6 }
  0x7c   : > { %p732_p11 = pnand %p731_p9, %p1225_p5 }
  0x7d   : > { %p737_p8 = por %p736_p13, %p735_p6 }
  0x7e   : > { %p733_p3 = pneg %p732_p11 }
  0x7f   : > { %p739_p7 = por %p738_p0, %p737_p8 }
  0x81   : > { %p740_p4 = pnand %p739_p7, %p733_p3 }
  0x83   : > { %743 = shalt.err (!%p740_p4)
}
  0x84   : > { %575 = dma.vmem_to_hbm [thread:$0]  (%p1225_p5), %s1095_s10, 128, %s1093_s6, %s1106_s22  }
  0x85   : > { %s334_s13 = scalar_lea.sflag [#allocation4], %s1054_s12  ;;  %s744_s25 = scalar_lea.vmem %s1104_s21, 128 }
  0x86   : > { %p745_p10 = scmp.ne.s32.totalorder %s1104_s21, %s744_s25  ;;  %s867_s5 = smov [#allocation7]  }
  0x87   : > { %s748_s11 = sshll.u32 %s867_s5, 4  ;;  %s749_s11 = int_to_ptr.vmem [resolvable:$false] %s748_s11 }
  0x88   : > { %p746_p12 = pnand %p745_p10, %p1225_p5  ;;  %s750_s27 = scalar_lea.vmem %s749_s11, 256 }
  0x89   : > { %p751_p2 = scmp.lt.s32.totalorder %s1104_s21, %s749_s11  ;;  %p752_p9 = scmp.lt.s32.totalorder %s750_s27, %s744_s25 }
  0x8a   : > { %p747_p1 = pneg %p746_p12 }
  0x8b   : > { %p753_p11 = por %p752_p9, %p751_p2 }
  0x8d   : > { %p754_p3 = pnand %p753_p11, %p747_p1 }
  0x8f   : > { %757 = shalt.err (!%p754_p3)
}
  0x90   : > { %s758_s12 = scalar_lea.hbm %s1102_s7, 128  ;;  %s762_s18 = scalar_lea.hbm %s1209_s2, 256 }
  0x91   : > { %p759_p6 = scmp.ne.s32.totalorder %s1102_s7, %s758_s12  ;;  %p763_p0 = scmp.lt.u32.totalorder %s1102_s7, %s1209_s2 }
  0x92   : > { %p764_p7 = scmp.lt.u32.totalorder %s762_s18, %s758_s12  ;;  %p766_p10 = scmp.lt.u32.totalorder %s758_s12, %s1102_s7 }
  0x93   : > { %p760_p13 = pnand %p759_p6, %p1225_p5 }
  0x94   : > { %p765_p4 = por %p764_p7, %p763_p0 }
  0x95   : > { %p761_p8 = pneg %p760_p13 }
  0x96   : > { %p767_p12 = por %p766_p10, %p765_p4 }
  0x98   : > { %p768_p1 = pnand %p767_p12, %p761_p8 }
  0x9a   : > { %771 = shalt.err (!%p768_p1)
}
  0x9b   : > { %574 = dma.vmem_to_hbm [thread:$0]  (%p1225_p5), %s1104_s21, 128, %s1102_s7, %s334_s13   ;;  %v305_v11 = vmul.f32 %v1085_v8, %v1085_v8  ;;  %v306_v12 = vmul.f32 %v1075_v4, %v1075_v4  ;;  %v312_v13 = vsub.f32 1.0, %v1077_v5  ;;  %v653_v15 = vpop.eup %652 }
  0x9c   : > { %v310_v16 = vmul.f32 0.6931472, %v653_v15  ;;  %v655_v18 = vpop.eup %654  ;;  %s285_s21 = scalar_lea.vmem [#allocation10], %s1057_s9  ;;  %s381_s25 = scalar_lea.hbm %s1211_s4, %s1073_s8 }
  0x9d   : > { %v307_v14 = vmul.f32 %v305_v11, %v1077_v5  ;;  %v313_v17 = vmul.f32 %v312_v13, %v306_v12  ;;  %v316_v20 = vmul.f32 0.6931472, %v655_v18  ;;  %s383_s7 = sshll.u32 %s285_s21, 4  ;;  %s868_s11 = smov [#allocation10]   ;;  %s1159_s7 = int_to_ptr.vmem [resolvable:$true] %s383_s7 }
  0x9e   : > { %s772_s5 = scalar_lea.vmem %s1159_s7, 128  ;;  %s776_s27 = sshll.u32 %s868_s11, 4  ;;  %s777_s27 = int_to_ptr.vmem [resolvable:$false] %s776_s27 }
  0x9f   : > { %v311_v19 = vmul.f32 %v310_v16, %v307_v14  ;;  %v317_v21 = vmul.f32 %v316_v20, %v313_v17  ;;  %p773_p2 = scmp.ne.s32.totalorder %s1159_s7, %s772_s5  ;;  %s778_s9 = scalar_lea.vmem %s777_s27, 256 }
  0xa0   : > { %p779_p3 = scmp.lt.s32.totalorder %s1159_s7, %s777_s27  ;;  %p780_p6 = scmp.lt.s32.totalorder %s778_s9, %s772_s5 }
  0xa1   : > { %v318_v22 = vadd.f32 %v317_v21, %v311_v19  ;;  %p774_p9 = pnand %p773_p2, %p1225_p5 }
  0xa2   : > { %p781_p13 = por %p780_p6, %p779_p3 }
  0xa3   : > { %v319_v23 = vmul.f32 -1.0, %v318_v22  ;;  %p775_p11 = pneg %p774_p9 }
  0xa5   : > { %332 = vst [vmem:[%s285_s21] sm:$0xff] %v319_v23  ;;  %p782_p8 = pnand %p781_p13, %p775_p11 }
  0xa7   : > { %785 = shalt.err (!%p782_p8)
}
  0xa8   : > { %s786_s12 = scalar_lea.hbm %s381_s25, 128  ;;  %s790_s6 = scalar_lea.hbm %s1211_s4, 256 }
  0xa9   : > { %p787_p0 = scmp.ne.s32.totalorder %s381_s25, %s786_s12  ;;  %p791_p10 = scmp.lt.u32.totalorder %s381_s25, %s1211_s4 }
  0xaa   : > { %p792_p12 = scmp.lt.u32.totalorder %s790_s6, %s786_s12  ;;  %p794_p2 = scmp.lt.u32.totalorder %s786_s12, %s381_s25 }
  0xab   : > { %p788_p7 = pnand %p787_p0, %p1225_p5 }
  0xac   : > { %p793_p1 = por %p792_p12, %p791_p10 }
  0xad   : > { %p789_p4 = pneg %p788_p7 }
  0xae   : > { %p795_p9 = por %p794_p2, %p793_p1 }
  0xb0   : > { %p796_p11 = pnand %p795_p9, %p789_p4 }
  0xb2   : > { %799 = shalt.err (!%p796_p11)
}
  0xb3   : > { %576 = dma.vmem_to_hbm [thread:$0]  (%p1225_p5), %s1159_s7, 128, %s381_s25, %s1106_s22  }
  0xb4 PF: > { %s395_s14 = sand.u32 1, %s842_s15   ;;  %p1226_p3 = scmp.ne.s32.totalorder %s1218_s30, 0 }
  0xb5   : > { %p1227_p6 = scmp.ge.s32.totalorder %s862_s20, 2  ;;  %s396_s21 = scalar_lea.sflag [#allocation4], %s395_s14 }
  0xb7   : > { %p588_p13 = pnand %p1227_p6, %p1226_p3 }
  0xb9   : > { %833 = dma.done.wait (!%p588_p13), %s396_s21, 128  }
  0xba   : > { %835 = vsyncadd (!%p588_p13), %s396_s21, 4294967168  ;;  %s1228_s24 = sadd.s32 4294967294, %s862_s20  }
  0xbb   : > { %s404_s13 = sand.u32 1, %s1228_s24  }
  0xbc   : > { %s405_s5 = scalar_lea.sflag [#allocation9], %s404_s13 }
  0xbd   : > { %837 = dma.done.wait (!%p588_p13), %s405_s5, 256  }
  0xbe   : > { %839 = vsyncadd (!%p588_p13), %s405_s5, 4294967040  ;;  %s27_s20 = sadd.s32 1, %s862_s20   ;;  %s1229_s15 = smov %s846_s16 }
  0xbf   : > { %p24_p5 = scmp.ge.s32.totalorder %s27_s20, 4   ;;  %s1230_s16 = smov %s850_s17 }
  0xc0   : > { %s1231_s17 = smov %s956_s29  ;;  %s1232_s18 = smov %s858_s19 }
  0xc1   : > { %s1233_s19 = smov %s1235_s23  ;;  %26 = sbr.rel (!%p24_p5) target bundleno = 10 (0xa), region = 122 }
  0xc8   :  { %419 = vsyncpa [#allocation3], 1 }
  0xc9   :  { %421 = vsyncpa [#allocation3 + $0x1], 1 }
  0xca   :  { %422 = vsyncpa [#allocation6], 1 }
  0xcb   :  { %424 = vsyncpa [#allocation6 + $0x1], 1 }
  0xcc   :  { %425 = vsyncpa [#allocation4], 1 }
  0xcd   :  { %427 = vsyncpa [#allocation4 + $0x1], 1 }
  0xce   :  { %428 = vsyncpa [#allocation9], 1 }
  0xcf   :  { %430 = vsyncpa [#allocation9 + $0x1], 1 }

</bundles_post_ra>
